<compile_context>
chip_gen: v6e
topology: v6e:2x2x1
jax: 0.10.0
libtpu: 0.0.40
codegen_flags: <defaults>
</compile_context>

<pallas_src>
import functools

import jax
import jax.numpy as jnp
from jax.experimental import pallas as pl
from jax.experimental.pallas import tpu as pltpu


def _cosine_margin_kernel(label_ref, x_ref, wt_ref, out_ref, *, s, m, block_o):
    # label_ref: (B, 1)        int32  VMEM (resident across class tiles)
    # x_ref:     (B, K)        native dtype VMEM (resident across class tiles)
    # wt_ref:    (K, BLOCK_O)  native dtype VMEM (pipelined weight^T tile)
    # out_ref:   (B, BLOCK_O)  float32 VMEM
    j = pl.program_id(0)

    x = x_ref[...]          # raw operands go straight to the MXU
    wt = wt_ref[...]

    # F.normalize eps = 1e-12 on the norm  ==  1e-24 on the sum of squares.
    eps2 = jnp.float32(1e-24)

    # Inverse row norm of x: (B, 1), f32.  rsqrt lowers to the EUP slot.
    x_f32 = x.astype(jnp.float32)
    inv_xnorm = jax.lax.rsqrt(
        jnp.maximum(jnp.sum(x_f32 * x_f32, axis=-1, keepdims=True), eps2))

    # Inverse column norm of this weight^T tile: (1, BLOCK_O), f32.
    wt_f32 = wt.astype(jnp.float32)
    inv_wnorm = jax.lax.rsqrt(
        jnp.maximum(jnp.sum(wt_f32 * wt_f32, axis=0, keepdims=True), eps2))

    # Raw matmul on the MXU, f32 accumulate. (B, K) @ (K, BLOCK_O) -> (B, BLOCK_O)
    raw = jnp.dot(x, wt, preferred_element_type=jnp.float32)

    # Fold s and both inverse norms into a post-matmul scale.
    scaled = raw * ((jnp.float32(s) * inv_xnorm) * inv_wnorm)

    # Margin: subtract s*m at the label column (global column = j*BLOCK_O + col).
    B, TO = scaled.shape
    col_ids = jax.lax.broadcasted_iota(jnp.int32, (B, TO), 1) + j * block_o
    labels = label_ref[...]  # (B, 1) int32, broadcasts against (B, BLOCK_O)
    out_ref[...] = jnp.where(col_ids == labels,
                             scaled - jnp.float32(s * m),
                             scaled)


def cosine_margin_product(x, label, weight, *, s=30.0, m=0.35, block_o=256):
    """x: (B, K); label: (B,) int; weight: (O, K)  ->  (B, O) float32 logits."""
    B, K = x.shape
    O, Kw = weight.shape
    assert K == Kw, "in_feature mismatch between x and weight"

    # One-time transpose outside the kernel: MXU consumes a K-major RHS.
    wt = weight.T  # (K, O)

    # Pad the class dimension up to a multiple of the tile width (128-aligned,
    # lane-dense output tiles -> unmasked vector stores).
    n_tiles = -(-O // block_o)
    o_pad = n_tiles * block_o
    if o_pad != O:
        wt = jnp.pad(wt, ((0, 0), (0, o_pad - O)))

    label2d = label.astype(jnp.int32).reshape(B, 1)

    kernel = functools.partial(
        _cosine_margin_kernel, s=float(s), m=float(m), block_o=block_o)

    bytes_accessed = (wt.size * wt.dtype.itemsize
                      + x.size * x.dtype.itemsize
                      + B * o_pad * 4)

    out = pl.pallas_call(
        kernel,
        out_shape=jax.ShapeDtypeStruct((B, o_pad), jnp.float32),
        grid_spec=pltpu.PrefetchScalarGridSpec(
            num_scalar_prefetch=0,
            grid=(n_tiles,),
            in_specs=[
                pl.BlockSpec((B, 1), lambda j: (0, 0)),        # label (resident)
                pl.BlockSpec((B, K), lambda j: (0, 0)),        # x     (resident)
                pl.BlockSpec((K, block_o), lambda j: (0, j)),  # W^T tile (pipelined)
            ],
            out_specs=pl.BlockSpec((B, block_o), lambda j: (0, j)),
        ),
        compiler_params=pltpu.CompilerParams(
            # Independent class tiles -> shard across v7x's 2 TensorCores.
            dimension_semantics=("parallel",),
            # Explicit, generation-safe VMEM budget (<= scoped default on
            # v6e/v7x, still far below v5e/v6e/v7x physical capacity).
            vmem_limit_bytes=32 * 1024 * 1024,
        ),
        cost_estimate=pl.CostEstimate(
            flops=2 * B * o_pad * K,
            transcendentals=B + o_pad,
            bytes_accessed=bytes_accessed,
        ),
    )(label2d, x, wt)

    return out[:, :O] if o_pad != O else out


def _xavier_uniform(key, shape, dtype=jnp.float32):
    # nn.init.xavier_uniform_ for a (fan_out, fan_in) weight matrix.
    fan_out, fan_in = shape
    limit = (6.0 / (fan_in + fan_out)) ** 0.5
    return jax.random.uniform(key, shape, dtype, minval=-limit, maxval=limit)


def _reference(x, label, w, s, m):
    xn = x / jnp.maximum(jnp.linalg.norm(x, axis=1, keepdims=True), 1e-12)
    wn = w / jnp.maximum(jnp.linalg.norm(w, axis=1, keepdims=True), 1e-12)
    cosine = xn @ wn.T
    one_hot = jax.nn.one_hot(label, w.shape[0], dtype=cosine.dtype)
    return s * (cosine - one_hot * m)


if __name__ == "__main__":
    # Small shapes consistent with the module (in_feature=128), with enough
    # classes to exercise the tiled/pipelined class dimension.
    B, IN_F, OUT_F = 8, 128, 1024
    S, M = 30.0, 0.35

    key = jax.random.PRNGKey(0)
    kx, kw, kl = jax.random.split(key, 3)
    x = jax.random.normal(kx, (B, IN_F), dtype=jnp.float32)
    weight = _xavier_uniform(kw, (OUT_F, IN_F))
    label = jax.random.randint(kl, (B,), 0, OUT_F, dtype=jnp.int32)

    # f32 path
    out = jax.block_until_ready(
        cosine_margin_product(x, label, weight, s=S, m=M, block_o=256))
    expected = _reference(x, label, weight, S, M)
    assert out.shape == (B, OUT_F) and out.dtype == jnp.float32
    assert jnp.allclose(out, expected, atol=1e-3, rtol=1e-3)

    # bf16 operands: MXU stays in bf16 (f32 accumulate); looser tolerance.
    out_bf16 = jax.block_until_ready(
        cosine_margin_product(x.astype(jnp.bfloat16), label,
                              weight.astype(jnp.bfloat16),
                              s=S, m=M, block_o=256))
    assert out_bf16.shape == (B, OUT_F) and out_bf16.dtype == jnp.float32
    assert jnp.allclose(out_bf16, expected, atol=0.5, rtol=0.0)

    # Non-multiple class count exercises the padding path (like out_feature=10575).
    O2 = 600
    w2 = _xavier_uniform(kw, (O2, IN_F))
    label2 = jax.random.randint(kl, (B,), 0, O2, dtype=jnp.int32)
    out2 = jax.block_until_ready(
        cosine_margin_product(x, label2, w2, s=S, m=M, block_o=256))
    expected2 = _reference(x, label2, w2, S, M)
    assert out2.shape == (B, O2)
    assert jnp.allclose(out2, expected2, atol=1e-3, rtol=1e-3)

    print("KERNEL_OK")
</pallas_src>

<mosaic_0001>
module attributes {stable_mosaic.version = 11 : i64} {
  func.func @_cosine_margin_kernel(%arg0: i32, %arg1: memref<8x1xi32, #tpu.memory_space<vmem>>, %arg2: memref<8x128xf32, #tpu.memory_space<vmem>>, %arg3: memref<128x256xf32, #tpu.memory_space<vmem>>, %arg4: memref<8x256xf32, #tpu.memory_space<vmem>>) attributes {dimension_semantics = [#tpu.dimension_semantics<parallel>], iteration_bounds = array<i64: 4>, scalar_prefetch = 0 : i64, scratch_operands = 0 : i64, tpu.core_type = #tpu.core_type<tc>, window_params = [{pipeline_mode = #tpu.pipeline_mode<synchronous>, transform_indices = @transform_0, window_bounds = array<i64: 8, 1>}, {pipeline_mode = #tpu.pipeline_mode<synchronous>, transform_indices = @transform_1, window_bounds = array<i64: 8, 128>}, {transform_indices = @transform_2, window_bounds = array<i64: 128, 256>}, {transform_indices = @transform_3, window_bounds = array<i64: 8, 256>}]} {
    %c0 = arith.constant 0 : index
    %c0_0 = arith.constant 0 : index
    %0 = vector.load %arg2[%c0, %c0_0] : memref<8x128xf32, #tpu.memory_space<vmem>>, vector<8x128xf32>
    %c0_1 = arith.constant 0 : index
    %c0_2 = arith.constant 0 : index
    %1 = vector.load %arg3[%c0_1, %c0_2] : memref<128x256xf32, #tpu.memory_space<vmem>>, vector<128x256xf32>
    %2 = arith.mulf %0, %0 : vector<8x128xf32>
    %cst = arith.constant dense<0.000000e+00> : vector<8xf32>
    %3 = vector.multi_reduction <add>, %2, %cst [1] : vector<8x128xf32> to vector<8xf32>
    %4 = vector.shape_cast %3 : vector<8xf32> to vector<8x1xf32>
    %cst_3 = arith.constant 1.000000e-24 : f32
    %5 = vector.broadcast %cst_3 : f32 to vector<8x1xf32>
    %6 = arith.maximumf %4, %5 : vector<8x1xf32>
    %7 = math.rsqrt %6 : vector<8x1xf32>
    %8 = arith.mulf %1, %1 : vector<128x256xf32>
    %cst_4 = arith.constant dense<0.000000e+00> : vector<256xf32>
    %9 = vector.multi_reduction <add>, %8, %cst_4 [0] : vector<128x256xf32> to vector<256xf32>
    %10 = vector.shape_cast %9 : vector<256xf32> to vector<1x256xf32>
    %cst_5 = arith.constant 1.000000e-24 : f32
    %11 = vector.broadcast %cst_5 : f32 to vector<1x256xf32>
    %12 = arith.maximumf %10, %11 : vector<1x256xf32>
    %13 = math.rsqrt %12 : vector<1x256xf32>
    %cst_6 = arith.constant dense<0.000000e+00> : vector<8x256xf32>
    %14 = tpu.matmul %0, %1, %cst_6 {dimension_numbers = #tpu.dot_dimension_numbers<[1], [0], [0], [1], [0, 0, 1, 1], [], []>} : vector<8x128xf32>, vector<128x256xf32>, vector<8x256xf32> -> vector<8x256xf32>
    %cst_7 = arith.constant 3.000000e+01 : f32
    %15 = vector.broadcast %cst_7 : f32 to vector<8x1xf32>
    %16 = arith.mulf %15, %7 : vector<8x1xf32>
    %17 = vector.broadcast %16 : vector<8x1xf32> to vector<8x256xf32>
    %18 = vector.broadcast %13 : vector<1x256xf32> to vector<8x256xf32>
    %19 = arith.mulf %17, %18 : vector<8x256xf32>
    %20 = arith.mulf %14, %19 : vector<8x256xf32>
    %21 = tpu.iota {dimensions = array<i32: 1>} : vector<8x256xi32>
    %c256_i32 = arith.constant 256 : i32
    %22 = arith.muli %arg0, %c256_i32 : i32
    %23 = vector.broadcast %22 : i32 to vector<8x256xi32>
    %24 = arith.addi %21, %23 : vector<8x256xi32>
    %c0_8 = arith.constant 0 : index
    %c0_9 = arith.constant 0 : index
    %25 = vector.load %arg1[%c0_8, %c0_9] : memref<8x1xi32, #tpu.memory_space<vmem>>, vector<8x1xi32>
    %26 = vector.broadcast %25 : vector<8x1xi32> to vector<8x256xi32>
    %27 = arith.cmpi eq, %24, %26 : vector<8x256xi32>
    %cst_10 = arith.constant 1.050000e+01 : f32
    %28 = vector.broadcast %cst_10 : f32 to vector<8x256xf32>
    %29 = arith.subf %20, %28 : vector<8x256xf32>
    %30 = arith.select %27, %29, %20 : vector<8x256xi1>, vector<8x256xf32>
    %c0_11 = arith.constant 0 : index
    %c0_12 = arith.constant 0 : index
    %31 = vector.load %arg4[%c0_11, %c0_12] : memref<8x256xf32, #tpu.memory_space<vmem>>, vector<8x256xf32>
    tpu.vector_store %arg4[%c0_11, %c0_12], %30 {strides = array<i32>} : memref<8x256xf32, #tpu.memory_space<vmem>>, vector<8x256xf32>,
    return
  }
  func.func @transform_0(%arg0: i32) -> (i32, i32) {
    %c0_i32 = arith.constant 0 : i32
    %c0_i32_0 = arith.constant 0 : i32
    %c0_i32_1 = arith.constant 0 : i32
    return %c0_i32, %c0_i32_0 : i32, i32
  }
  func.func @transform_1(%arg0: i32) -> (i32, i32) {
    %c0_i32 = arith.constant 0 : i32
    %c0_i32_0 = arith.constant 0 : i32
    %c0_i32_1 = arith.constant 0 : i32
    return %c0_i32, %c0_i32_0 : i32, i32
  }
  func.func @transform_2(%arg0: i32) -> (i32, i32) {
    %c0_i32 = arith.constant 0 : i32
    %c0_i32_0 = arith.constant 0 : i32
    return %c0_i32, %arg0 : i32, i32
  }
  func.func @transform_3(%arg0: i32) -> (i32, i32) {
    %c0_i32 = arith.constant 0 : i32
    %c0_i32_0 = arith.constant 0 : i32
    return %c0_i32, %arg0 : i32, i32
  }
}

</mosaic_0001>

<bundles_post_ra>
// kernel: tpu_custom_call.1
= control target key start
LH: loop header
LB: loop body
LE: loop exit
PB: predicated region body
PF: predicated region fallthrough
CT: control target
= control target key end

     0   :  { %8 = vsyncpa [#allocation3], 0  ;;  %s972_s0 = inlined_call_operand.vmem [shape: s32[8,1], index: 0, kind: input, shape index: {}]   ;;  %s973_s1 = inlined_call_operand.vmem [shape: f32[8,128], index: 1, kind: input, shape index: {}]   ;;  %s974_s2 = inlined_call_operand.hbm [shape: f32[128,1024], index: 2, kind: input, shape index: {}]   ;;  %s975_s3 = inlined_call_operand.hbm [shape: f32[8,1024], index: 3, kind: output, shape index: {}]  }
   0x1   :  { %10 = vsyncpa [#allocation3 + $0x1], 0 }
   0x2   :  { %11 = vsyncpa [#allocation4], 0 }
   0x3   :  { %13 = vsyncpa [#allocation4 + $0x1], 0  ;;  %s685_s12 = smov 0   ;;  %s687_s13 = smov 0  }
   0x4   :  { %s689_s14 = smov 0   ;;  %s691_s15 = smov 0  }
   0x5 LB: > { %s706_s16 = sadd.s32 4294967295, %s656_s15   ;;  %s487_s17 = sadd.s32 4294967294, %s656_s15   ;;  %s656_s15 = sphi %s691_s15, %s990_s15   ;;  %s652_s14 = sphi %s689_s14, %s989_s14   ;;  %s648_s13 = sphi %s687_s13, %s988_s13   ;;  %s644_s12 = sphi %s685_s12, %s987_s12  }
   0x6   : > { %s710_s18 = sadd.s32 1, %s656_s15   ;;  %s68_s19 = sadd.s32 1, %s652_s14 }
   0x7   : > { %s65_s20 = ssub.s32 %s656_s15, %s710_s18  ;;  %p75_p0 = scmp.ne.s32.totalorder %s652_s14, %s648_s13 }
   0x8   : > { %p66_p1 = scmp.eq.s32.totalorder %s65_s20, 0  ;;  %p76_p2 = scmp.eq.s32.totalorder %s656_s15, 0 }
   0x9   : > { %p81_p3 = scmp.ne.s32.totalorder %s648_s13, %s644_s12  ;;  %p82_p4 = scmp.eq.s32.totalorder %s706_s16, 0 }
   0xa   : > { %s722_s21 = scalar_select %p66_p1, %s652_s14, %s68_s19  }
   0xb   : > { %p724_p5 = por %p76_p2, %p75_p0  ;;  %p728_p6 = por %p82_p4, %p81_p3 }
   0xc   : > { %p105_p7 = scmp.eq.s32.totalorder %s706_s16, 3  ;;  %p111_p8 = scmp.eq.s32.totalorder %s487_s17, 3 }
   0xd   : > { %s979_s23 = scalar_select %p728_p6, 1, 0 }
   0xe   : > { %p518_p9 = scmp.lt.s32.totalorder %s656_s15, 4  ;;  %p734_p10 = por %p105_p7, %p75_p0 }
   0xf   : > { %p738_p11 = por %p111_p8, %p81_p3  ;;  %s137_s26 = sand.u32 1, %s652_s14  }
  0x10   : > { %s980_s24 = scalar_select %p734_p10, 1, 0 }
  0x11   : > { %s981_s25 = scalar_select %p738_p11, 1, 0 }
  0x12   : > { %s504_s27 = sshll.u32 %s656_s15, 8  ;;  %s490_s28 = sshll.u32 %s137_s26, 8 }
  0x13   : > { %s747_s4 = scalar_lea.hbm %s974_s2, %s504_s27  ;;  %s141_s5 = scalar_lea.vmem [#allocation2], %s490_s28 }
  0x14   : > { %s148_s6 = sshll.u32 %s141_s5, 4  ;;  %p751_p12 = pnand %p518_p9, %p724_p5  ;;  %s755_s6 = int_to_ptr.vmem [resolvable:$true] %s148_s6 }
  0x15   : > { %s758_s8 = scalar_lea.sflag [#allocation3], %s137_s26  ;;  %s564_s9 = scalar_lea.hbm %s747_s4, 4096 }
  0x16   : > { %p565_p0 = scmp.ne.s32.totalorder %s747_s4, %s564_s9  ;;  %p566_p1 = pneg %p751_p12 }
  0x17   : > { %s569_s17 = scalar_lea.hbm %s974_s2, 16384  ;;  %p570_p4 = scmp.lt.s32.totalorder %s747_s4, %s974_s2 }
  0x18   : > { %p567_p2 = pnand %p566_p1, %p565_p0  ;;  %p571_p5 = scmp.lt.s32.totalorder %s569_s17, %s564_s9 }
  0x1a   : > { %p568_p3 = pneg %p567_p2  ;;  %p572_p7 = por %p571_p5, %p570_p4 }
  0x1c   : > { %p573_p8 = pnand %p572_p7, %p568_p3 }
  0x1e   : > { %576 = shalt.err (!%p573_p8)
}
  0x1f   : > { %s577_s22 = scalar_lea.vmem %s755_s6, 4096  ;;  %s658_s26 = smov [#allocation2]  }
  0x20   : > { %p578_p9 = scmp.ne.s32.totalorder %s755_s6, %s577_s22  ;;  %s582_s27 = sshll.u32 %s658_s26, 4  ;;  %s583_s27 = int_to_ptr.vmem [resolvable:$false] %s582_s27 }
  0x21   : > { %s584_s28 = scalar_lea.vmem %s583_s27, 8192  ;;  %p585_p2 = scmp.lt.s32.totalorder %s755_s6, %s583_s27 }
  0x22   : > { %p580_p13 = pnand %p578_p9, %p566_p1  ;;  %p586_p11 = scmp.lt.s32.totalorder %s584_s28, %s577_s22 }
  0x24   : > { %p581_p0 = pneg %p580_p13  ;;  %p587_p10 = por %p586_p11, %p585_p2 }
  0x26   : > { %p588_p6 = pnand %p587_p10, %p581_p0 }
  0x28   : > { %591 = shalt.err (!%p588_p6)
}
  0x29   : > { %s659_s29 = smov 1024   ;;  %s660_s30 = smov 256  }
  0x2a   : > { %s661_s5 = smov 16   ;;  %p156_p13 = scmp.lt.s32.totalorder %s656_s15, 5 }
  0x2b   : > { %513 = dma.hbm_to_vmem [thread:$0]  (!%p751_p12), %s747_s4, 4096, %s755_s6, %s758_s8, %s659_s29, %s660_s30, %s661_s5  }
  0x2c   : > { %p983_p1 = scmp.ge.s32.totalorder %s656_s15, 1 }
  0x2e   : > { %p157_p3 = pnand %p983_p1, %p156_p13 }
  0x2f   : > { %s783_s9 = sand.u32 (!%p157_p3), 1, %s648_s13   ;;  %p984_p6 = scmp.ne.s32.totalorder (!%p157_p3), %s979_s23, 0 }
  0x30   : > { %160 = sbr.rel (%p157_p3) target bundleno = 301 (0x12d), region = 32  ;;  %s494_s10 = sshll.u32 (!%p157_p3), %s783_s9, 8 }
  0x31   : > { %s163_s11 = scalar_lea.sflag (!%p157_p3), [#allocation3], %s783_s9  ;;  %s787_s17 = scalar_lea.vmem (!%p157_p3), [#allocation2], %s494_s10 }
  0x35   : > { %635 = dma.done.wait (%p984_p6), %s163_s11, 4096  }
  0x36   : > { %637 = vsyncadd (%p984_p6), %s163_s11, 4294963200  ;;  %v662_v0 = vmov 0.0   ;;  %v663_v1 = vmov 0   ;;  %v794_v2 = vld [vmem:[%s787_s17 + $0xf8] sm:$0xff]  ;;  %v797_v3 = vld [vmem:[%s787_s17 + $0xf0] sm:$0xff]  ;;  %s496_s8 = sshll.u32 %s706_s16, 8 }
  0x37   : > { %371 = vmatprep.mubr.f32.mxu0 %v662_v0  ;;  %557 = vset.pattern.permute.xlu0 %v663_v1  ;;  %v800_v4 = vld [vmem:[%s787_s17 + $0xe8] sm:$0xff]  ;;  %v804_v5 = vld [vmem:[%s787_s17 + $0xe0] sm:$0xff]  ;;  %v808_v6 = vld [vmem:[%s787_s17 + $0xd8] sm:$0xff]  ;;  %s495_s19 = sshll.u32 %s783_s9, 4  ;;  %s936_s27 = scalar_lea.hbm %s975_s3, %s496_s8 }
  0x38   : > { %307 = vmatprep.subr.mxu0 %v794_v2  ;;  %v812_v7 = vld [vmem:[%s787_s17 + $0xd0] sm:$0xff]  ;;  %v816_v8 = vld [vmem:[%s787_s17 + $0xc8] sm:$0xff]  ;;  %v820_v9 = vld [vmem:[%s787_s17 + $0xc0] sm:$0xff]  ;;  %s188_s16 = scalar_lea.vmem [#allocation5], %s495_s19  ;;  %s403_s28 = scalar_lea.sflag [#allocation4], %s783_s9 }
  0x39   : > { %308 = vmatpush1.msra.mxu0 %v797_v3  ;;  %v824_v10 = vld [vmem:[%s787_s17 + $0xb8] sm:$0xff]  ;;  %v828_v11 = vld [vmem:[%s787_s17 + $0xb0] sm:$0xff]  ;;  %v831_v12 = vld [vmem:[%s787_s17 + $0xa8] sm:$0xff]  ;;  %s417_s20 = sshll.u32 %s188_s16, 4  ;;  %p985_p11 = scmp.ne.s32.totalorder %s980_s24, 0  ;;  %s418_s20 = int_to_ptr.vmem [resolvable:$true] %s417_s20 }
  0x3a   : > { %309 = vmatprep.subr.mxu0 %v800_v4  ;;  %v835_v13 = vld [vmem:[%s787_s17 + $0xa0] sm:$0xff]  ;;  %v838_v14 = vld [vmem:[%s787_s17 + $0x98] sm:$0xff]  ;;  %v841_v15 = vld [vmem:[%s787_s17 + $0x28] sm:$0xff]  ;;  %s592_s29 = scalar_lea.vmem %s418_s20, 256  ;;  %s664_s30 = smov [#allocation5]  }
  0x3b   : > { %310 = vmatpush1.msra.mxu0 %v804_v5  ;;  %v845_v16 = vld [vmem:[%s787_s17 + $0x20] sm:$0xff]  ;;  %v848_v17 = vld [vmem:[%s787_s17 + $0x18] sm:$0xff]  ;;  %v851_v18 = vld [vmem:[%s787_s17 + $0x10] sm:$0xff]  ;;  %v234_v19 = vmul.f32 %v841_v15, %v841_v15  ;;  %p593_p10 = scmp.ne.s32.totalorder %s418_s20, %s592_s29  ;;  %s596_s5 = sshll.u32 %s664_s30, 4  ;;  %s597_s5 = int_to_ptr.vmem [resolvable:$false] %s596_s5 }
  0x3c   : > { %311 = vmatprep.subr.mxu0 %v808_v6  ;;  %v232_v20 = vmul.f32 %v848_v17, %v848_v17  ;;  %v231_v21 = vmul.f32 %v851_v18, %v851_v18  ;;  %v861_v22 = vld [vmem:[%s787_s17 + $0x8] sm:$0xff]  ;;  %v864_v23 = vld [vmem:[%s787_s17] sm:$0xff]  ;;  %v210_v25 = vld [vmem:[%s787_s17 + $0x90] sm:$0xff]  ;;  %v233_v27 = vmul.f32 %v845_v16, %v845_v16  ;;  %s598_s10 = scalar_lea.vmem %s597_s5, 512  ;;  %p599_p5 = scmp.lt.s32.totalorder %s418_s20, %s597_s5 }
  0x3d   : > { %312 = vmatpush1.msra.mxu0 %v812_v7  ;;  %v869_v24 = vld [vmem:[%s973_s1] sm:$0xff]  ;;  %v199_v26 = vld [vmem:[%s787_s17 + $0x38] sm:$0xff]  ;;  %v230_v28 = vmul.f32 %v861_v22, %v861_v22  ;;  %v229_v29 = vmul.f32 %v864_v23, %v864_v23  ;;  %v209_v31 = vld [vmem:[%s787_s17 + $0x88] sm:$0xff]  ;;  %p594_p12 = pnand %p593_p10, %p985_p11  ;;  %p600_p7 = scmp.lt.s32.totalorder %s598_s10, %s592_s29 }
  0x3e   : > { %313 = vmatprep.subr.mxu0 %v816_v8  ;;  %v224_v30 = vmul.f32 %v869_v24, %v869_v24  ;;  %v236_v32 = vmul.f32 %v199_v26, %v199_v26  ;;  %v198_v33 = vld [vmem:[%s787_s17 + $0x30] sm:$0xff]  ;;  %v208_v34 = vld [vmem:[%s787_s17 + $0x80] sm:$0xff]  ;;  %v207_v38 = vld [vmem:[%s787_s17 + $0x78] sm:$0xff]  ;;  %v246_v62 = vmul.f32 %v209_v31, %v209_v31 }
  0x3f   : > { %314 = vmatpush1.msra.mxu0 %v820_v9  ;;  %v235_v35 = vmul.f32 %v198_v33, %v198_v33  ;;  %v282_v36 = vadd.f32 %v232_v20, %v230_v28  ;;  %v261_v37 = vadd.f32 %v231_v21, %v229_v29  ;;  %v201_v39 = vld [vmem:[%s787_s17 + $0x48] sm:$0xff]  ;;  %v200_v40 = vld [vmem:[%s787_s17 + $0x40] sm:$0xff]  ;;  %v206_v41 = vld [vmem:[%s787_s17 + $0x70] sm:$0xff]  ;;  %v244_v58 = vmul.f32 %v207_v38, %v207_v38  ;;  %p595_p4 = pneg %p594_p12  ;;  %p601_p8 = por %p600_p7, %p599_p5 }
  0x40   : > { %315 = vmatprep.subr.mxu0 %v824_v10  ;;  %225 = vadd.xlane.f32.xlu0 %v224_v30  ;;  %v238_v42 = vmul.f32 %v201_v39, %v201_v39  ;;  %v237_v43 = vmul.f32 %v200_v40, %v200_v40  ;;  %v205_v46 = vld [vmem:[%s787_s17 + $0x68] sm:$0xff]  ;;  %v203_v47 = vld [vmem:[%s787_s17 + $0x58] sm:$0xff]  ;;  %v202_v48 = vld [vmem:[%s787_s17 + $0x50] sm:$0xff]  ;;  %v243_v59 = vmul.f32 %v206_v41, %v206_v41 }
  0x41   : > { %316 = vmatpush1.msra.mxu0 %v828_v11  ;;  %v283_v44 = vadd.f32 %v282_v36, %v234_v19  ;;  %v262_v45 = vadd.f32 %v261_v37, %v233_v27  ;;  %v204_v49 = vld [vmem:[%s787_s17 + $0x60] sm:$0xff]  ;;  %v240_v50 = vmul.f32 %v203_v47, %v203_v47  ;;  %v239_v51 = vmul.f32 %v202_v48, %v202_v48  ;;  %p602_p9 = pnand %p601_p8, %p595_p4 }
  0x42   : > { %317 = vmatprep.subr.mxu0 %v831_v12  ;;  %v242_v54 = vmul.f32 %v205_v46, %v205_v46  ;;  %v241_v55 = vmul.f32 %v204_v49, %v204_v49  ;;  %v245_v63 = vmul.f32 %v208_v34, %v208_v34  ;;  %v248_v19 = vmul.f32 %v838_v14, %v838_v14 }
  0x43   : > { %318 = vmatpush1.msra.mxu0 %v835_v13  ;;  %v284_v52 = vadd.f32 %v283_v44, %v236_v32  ;;  %v263_v53 = vadd.f32 %v262_v45, %v235_v35  ;;  %v247_v20 = vmul.f32 %v210_v25, %v210_v25  ;;  %v250_v28 = vmul.f32 %v831_v12, %v831_v12 }
  0x44   : > { %319 = vmatprep.subr.mxu0 %v838_v14  ;;  %v249_v29 = vmul.f32 %v835_v13, %v835_v13  ;;  %v252_v14 = vmul.f32 %v824_v10, %v824_v10  ;;  %v254_v12 = vmul.f32 %v816_v8, %v816_v8  ;;  %v253_v13 = vmul.f32 %v820_v9, %v820_v9  ;;  %v390_v10 = vld [vmem:[%s972_s0] sm:$0xff] }
  0x45   : > { %320 = vmatpush1.msra.mxu0 %v210_v25  ;;  %v285_v56 = vadd.f32 %v284_v52, %v238_v42  ;;  %v264_v57 = vadd.f32 %v263_v53, %v237_v43  ;;  %v251_v25 = vmul.f32 %v828_v11, %v828_v11  ;;  %v255_v11 = vmul.f32 %v812_v7, %v812_v7 }
  0x46   : > { %321 = vmatprep.subr.mxu0 %v209_v31  ;;  %v257_v8 = vmul.f32 %v804_v5, %v804_v5  ;;  %v256_v36 = vmul.f32 %v808_v6, %v808_v6  ;;  %v258_v7 = vmul.f32 %v800_v4, %v800_v4 }
  0x47   : > { %322 = vmatpush1.msra.mxu0 %v208_v34  ;;  %v286_v60 = vadd.f32 %v285_v56, %v240_v50  ;;  %v265_v61 = vadd.f32 %v264_v57, %v239_v51  ;;  %v383_v51 = vlaneseq  ;;  %v387_v56 = vstv %s496_s8 }
  0x48   : > { %323 = vmatprep.subr.mxu0 %v207_v38 }
  0x49   : > { %324 = vmatpush1.msra.mxu0 %v206_v41  ;;  %v287_v0 = vadd.f32 %v286_v60, %v242_v54  ;;  %v266_v1 = vadd.f32 %v265_v61, %v241_v55  ;;  %v384_v53 = vand.u32 127, %v383_v51 }
  0x4a   : > { %325 = vmatprep.subr.mxu0 %v205_v46 }
  0x4b   : > { %326 = vmatpush1.msra.mxu0 %v204_v49  ;;  %v288_v21 = vadd.f32 %v287_v0, %v244_v58  ;;  %v267_v27 = vadd.f32 %v266_v1, %v243_v59  ;;  %v385_v58 = vadd.s32 128, %v384_v53  ;;  %v388_v60 = vadd.s32 %v387_v56, %v384_v53 }
  0x4c   : > { %327 = vmatprep.subr.mxu0 %v203_v47 }
  0x4d   : > { %328 = vmatpush1.msra.mxu0 %v202_v48  ;;  %v289_v30 = vadd.f32 %v288_v21, %v246_v62  ;;  %v268_v31 = vadd.f32 %v267_v27, %v245_v63  ;;  %v389_v0 = vadd.s32 %v387_v56, %v385_v58 }
  0x4e   : > { %329 = vmatprep.subr.mxu0 %v201_v39 }
  0x4f   : > { %330 = vmatpush1.msra.mxu0 %v200_v40  ;;  %v269_v32 = vadd.f32 %v268_v31, %v247_v20 }
  0x50   : > { %331 = vmatprep.subr.mxu0 %v199_v26  ;;  %v290_v26 = vadd.f32 %v289_v30, %v248_v19 }
  0x51   : > { %332 = vmatpush1.msra.mxu0 %v198_v33 }
  0x52   : > { %333 = vmatprep.subr.mxu0 %v841_v15  ;;  %v291_v15 = vadd.f32 %v290_v26, %v250_v28 }
  0x53   : > { %334 = vmatpush1.msra.mxu0 %v845_v16  ;;  %v270_v16 = vadd.f32 %v269_v32, %v249_v29 }
  0x54   : > { %335 = vmatprep.subr.mxu0 %v848_v17  ;;  %v292_v17 = vadd.f32 %v291_v15, %v252_v14 }
  0x55   : > { %336 = vmatpush1.msra.mxu0 %v851_v18  ;;  %v271_v18 = vadd.f32 %v270_v16, %v251_v25 }
  0x56   : > { %337 = vmatprep.subr.mxu0 %v861_v22  ;;  %v293_v9 = vadd.f32 %v292_v17, %v254_v12  ;;  %392 = vperm.xlu0 %557, %v390_v10   ;;  %v259_v22 = vmul.f32 %v797_v3, %v797_v3 }
  0x57   : > { %338 = vmatpush1.msra.mxu0 %v864_v23  ;;  %v272_v33 = vadd.f32 %v271_v18, %v253_v13 }
  0x58   : > { %372 = vmatmul.mubr.f32.vlgmr.msra.gmra.mxu0 %v869_v24  ;;  %v260_v24 = vmul.f32 %v794_v2, %v794_v2  ;;  %v294_v37 = vadd.f32 %v293_v9, %v256_v36 }
  0x59   : > { %v273_v23 = vadd.f32 %v272_v33, %v255_v11 }
  0x5a   : > { %v295_v5 = vadd.f32 %v294_v37, %v258_v7 }
  0x5b   : > { %v274_v34 = vadd.f32 %v273_v23, %v257_v8 }
  0x5c   : > { %v296_v38 = vadd.f32 %v295_v5, %v260_v24 }
  0x5d   : > { %v275_v35 = vadd.f32 %v274_v34, %v259_v22 }
  0x5e   : > { %v297_v40 = vrot.slane %v296_v38, 4 }
  0x5f   : > { %v276_v39 = vrot.slane %v275_v35, 4 }
  0x60   : > { %v298_v42 = vadd.f32 %v297_v40, %v296_v38 }
  0x61   : > { %v277_v41 = vadd.f32 %v276_v39, %v275_v35 }
  0x62   : > { %v299_v43 = vrot.slane %v298_v42, 2 }
  0x63   : > { %v278_v3 = vrot.slane %v277_v41, 2 }
  0x64   : > { %v300_v45 = vadd.f32 %v299_v43, %v298_v42 }
  0x65   : > { %v279_v44 = vadd.f32 %v278_v3, %v277_v41 }
  0x66   : > { %v301_v47 = vrot.slane %v300_v45, 1 }
  0x67   : > { %v280_v46 = vrot.slane %v279_v44, 1 }
  0x68   : > { %v302_v49 = vadd.f32 %v301_v47, %v300_v45 }
  0x69   : > { %v281_v4 = vadd.f32 %v280_v46, %v279_v44 }
  0x6a   : > { %v304_v50 = vmax.f32 %v302_v49, 1e-24 }
  0x6b   : > { %v303_v2 = vmax.f32 %v281_v4, 1e-24 }
  0xc9   : > { %v226_v6 = vpop.xlane.xlu0 %225 }
  0xca   : > { %v227_v48 = vmax.f32 %v226_v6, 1e-24 }
  0xcc   : > { %558 = vrsqrt.f32 %v227_v48 }
  0xcd   : > { %560 = vrsqrt.f32 %v303_v2 }
  0xce   : > { %562 = vrsqrt.f32 %v304_v50 }
  0xd1   : > { %v393_v62 = vpop.permute.xlu0 %392 }
  0xd2   : > { %vm394_vm0 = vcmp.eq.s32.totalorder %v388_v60, %v393_v62  ;;  %vm395_vm1 = vcmp.eq.s32.totalorder %v389_v0, %v393_v62 }
  0xd9   : > { %v559_v52 = vpop.eup %558 }
  0xda   : > { %v378_v54 = vmul.f32 30.0, %v559_v52  ;;  %v561_v55 = vpop.eup %560 }
  0xdb   : > { %v563_v57 = vpop.eup %562 }
  0xdc   : > { %v379_v59 = vmul.f32 %v561_v55, %v378_v54  ;;  %v380_v61 = vmul.f32 %v563_v57, %v378_v54 }
 0x118   : > { %v373_v63 = vpop.f32.mrf.mxu0 }
 0x119   : > { %v381_v1 = vmul.f32 %v379_v59, %v373_v63 }
 0x11a   : > { %v375_v19 = vpop.f32.mrf.mxu0 }
 0x11b   : > { %v497_v20 = vadd.f32 -10.5, %v381_v1  ;;  %v382_v21 = vmul.f32 %v380_v61, %v375_v19 }
 0x11d   : > { %v498_v27 = vadd.f32 -10.5, %v382_v21  ;;  %v398_v28 = vsel %vm394_vm0, %v497_v20, %v381_v1 }
 0x11e   : > { %400 = vst [vmem:[%s188_s16] sm:$0xff] %v398_v28 }
 0x11f   : > { %v399_v29 = vsel %vm395_vm1, %v498_v27, %v382_v21 }
 0x120   : > { %401 = vst [vmem:[%s188_s16 + $0x8] sm:$0xff] %v399_v29 }
 0x121   : > { %605 = shalt.err (!%p602_p9)
}
 0x122   : > { %s606_s11 = scalar_lea.hbm %s936_s27, 256  ;;  %s610_s23 = scalar_lea.hbm %s975_s3, 1024 }
 0x123   : > { %p607_p0 = scmp.ne.s32.totalorder %s936_s27, %s606_s11  ;;  %p611_p1 = scmp.lt.s32.totalorder %s936_s27, %s975_s3 }
 0x124   : > { %p612_p3 = scmp.lt.s32.totalorder %s610_s23, %s606_s11 }
 0x125   : > { %p608_p2 = pnand %p607_p0, %p985_p11 }
 0x126   : > { %p613_p6 = por %p612_p3, %p611_p1 }
 0x127   : > { %p609_p13 = pneg %p608_p2 }
 0x129   : > { %p614_p10 = pnand %p613_p6, %p609_p13 }
 0x12b   : > { %617 = shalt.err (!%p614_p10)
}
 0x12c   : > { %508 = dma.vmem_to_hbm [thread:$0]  (%p985_p11), %s418_s20, 256, %s936_s27, %s403_s28  }
 0x12d PF: > { %p519_p12 = scmp.ge.s32.totalorder %s656_s15, 2  ;;  %s429_s7 = sand.u32 1, %s644_s12  }
 0x12e   : > { %p986_p4 = scmp.ne.s32.totalorder %s981_s25, 0  ;;  %s430_s8 = scalar_lea.sflag [#allocation4], %s429_s7 }
 0x130   : > { %p515_p5 = pnand %p519_p12, %p986_p4 }
 0x132   : > { %p516_p7 = pneg %p515_p5 }
 0x134   : > { %639 = dma.done.wait (%p516_p7), %s430_s8, 256  }
 0x135   : > { %641 = vsyncadd (%p516_p7), %s430_s8, 4294967040  ;;  %p16_p8 = scmp.ge.s32.totalorder %s710_s18, 6   ;;  %s987_s12 = smov %s648_s13 }
 0x136   : > { %s988_s13 = smov %s652_s14  ;;  %s989_s14 = smov %s722_s21 }
 0x137   : > { %s990_s15 = smov %s710_s18  ;;  %18 = sbr.rel (!%p16_p8) target bundleno = 5 (0x5), region = 77 }
 0x13c   :  { %435 = vsyncpa [#allocation3], 1 }
 0x13d   :  { %437 = vsyncpa [#allocation3 + $0x1], 1 }
 0x13e   :  { %438 = vsyncpa [#allocation4], 1 }
 0x13f   :  { %440 = vsyncpa [#allocation4 + $0x1], 1 }

</bundles_post_ra>
